<compile_context>
chip_gen: v5e
topology: v5e:2x2
jax: 0.10.0
libtpu: 0.0.40
codegen_flags: <defaults>
</compile_context>

<pallas_src>
import jax
import jax.numpy as jnp
from jax.experimental import pallas as pl
from jax.experimental.pallas import tpu as pltpu

LANE = 128
SUBLANE = 8


def _round_up(x, m):
    return ((x + m - 1) // m) * m


def _cdiv(a, b):
    return (a + b - 1) // b


def demographic_adversary_kernel(
    x_ref, w1_ref, b1_ref, w2_ref, b2_ref, w3_ref, b3_ref, out_ref
):
    # In-kernel f32 -> bf16 cast of the activation tile (VPU work hidden under DMA/MXU).
    x = x_ref[...].astype(jnp.bfloat16)

    # Layer 1: Linear + ReLU (bf16 MXU operands, f32 accumulate; elementwise stays f32).
    h1 = jnp.dot(x, w1_ref[...], preferred_element_type=jnp.float32) + b1_ref[...]
    h1 = jnp.maximum(h1, 0.0)
    # TODO(synk): Dropout skipped (eval-mode identity).

    # Layer 2: Linear + ReLU
    h2 = jnp.dot(h1.astype(jnp.bfloat16), w2_ref[...],
                 preferred_element_type=jnp.float32) + b2_ref[...]
    h2 = jnp.maximum(h2, 0.0)
    # TODO(synk): Dropout skipped (eval-mode identity).

    # Output layer: Linear -> narrow logits block.  Only num_demographics lanes are
    # written (masked vst), but the 32x HBM-byte reduction dominates for this
    # memory-bound kernel.
    logits = jnp.dot(h2.astype(jnp.bfloat16), w3_ref[...],
                     preferred_element_type=jnp.float32) + b3_ref[...]
    out_ref[...] = logits.astype(out_ref.dtype)


def make_params(key, input_dim, hidden_dim, num_demographics):
    """PyTorch nn.Linear-equivalent init, stored transposed [in, out], f32, unpadded."""
    ks = jax.random.split(key, 6)
    h2 = hidden_dim // 2

    def lin(kw, kb, fan_in, fan_out):
        bound = 1.0 / float(fan_in) ** 0.5
        w = jax.random.uniform(kw, (fan_in, fan_out), jnp.float32, -bound, bound)
        b = jax.random.uniform(kb, (1, fan_out), jnp.float32, -bound, bound)
        return w, b

    w1, b1 = lin(ks[0], ks[1], input_dim, hidden_dim)
    w2, b2 = lin(ks[2], ks[3], hidden_dim, h2)
    w3, b3 = lin(ks[4], ks[5], h2, num_demographics)
    return {"w1": w1, "b1": b1, "w2": w2, "b2": b2, "w3": w3, "b3": b3}


def pad_and_cast_params(p):
    """Zero-pad the *internal* feature dims (hidden, hidden//2) to multiples of 128 lanes
    so intermediate activations are lane-dense; the output layer stays un-padded in its
    lane dim so the kernel writes a narrow logits block.  Matmul operands are cast to
    bf16; biases stay f32.  Padding is exact: padded weight rows/cols are zero, so padded
    activation columns are relu(0)=0 and contribute nothing downstream."""
    w1, b1 = p["w1"], p["b1"]
    w2, b2 = p["w2"], p["b2"]
    w3, b3 = p["w3"], p["b3"]
    d_in, hidden = w1.shape
    h2 = w2.shape[1]
    n_out = w3.shape[1]
    hidden_p = _round_up(hidden, LANE)
    h2_p = _round_up(h2, LANE)

    def pad2(a, rows, cols):
        return jnp.pad(a, ((0, rows - a.shape[0]), (0, cols - a.shape[1])))

    return {
        "w1": pad2(w1, d_in, hidden_p).astype(jnp.bfloat16),
        "b1": pad2(b1, 1, hidden_p),
        "w2": pad2(w2, hidden_p, h2_p).astype(jnp.bfloat16),
        "b2": pad2(b2, 1, h2_p),
        "w3": pad2(w3, h2_p, n_out).astype(jnp.bfloat16),   # lane dim left at n_out
        "b3": b3,                                            # (1, n_out) f32, unpadded
    }


def demographic_adversary_forward(x, padded_params, num_demographics, *, tile_m=1024):
    """x: [B, input_dim] f32.  Returns logits [B, num_demographics] f32."""
    b, d_in = x.shape
    w1, b1 = padded_params["w1"], padded_params["b1"]
    w2, b2 = padded_params["w2"], padded_params["b2"]
    w3, b3 = padded_params["w3"], padded_params["b3"]
    hidden_p = w1.shape[1]
    h2_p = w2.shape[1]
    n_out = w3.shape[1]
    assert n_out == num_demographics

    # Row tiling: pick the tile COUNT first (avoids up-to-2x batch padding for awkward
    # batch sizes), round the tile to a sublane multiple, and for batches >= 16 rows use
    # at least 2 tiles so the "parallel" batch axis can shard over v7x's two TensorCores.
    n_tiles = _cdiv(b, tile_m)
    if b >= 2 * SUBLANE:
        n_tiles = max(n_tiles, 2)
    tm = _round_up(_cdiv(b, n_tiles), SUBLANE)
    n_tiles = _cdiv(b, tm)
    b_pad = n_tiles * tm
    if b_pad != b:
        x = jnp.pad(x, ((0, b_pad - b), (0, 0)))
    # NOTE: x stays f32; the bf16 cast happens inside the kernel.

    flops = 2 * b_pad * (d_in * hidden_p + hidden_p * h2_p + h2_p * n_out)
    bytes_accessed = (
        x.size * x.dtype.itemsize
        + sum(int(a.size) * a.dtype.itemsize for a in (w1, b1, w2, b2, w3, b3))
        + b_pad * n_out * 4
    )

    logits_padded = pl.pallas_call(
        demographic_adversary_kernel,
        out_shape=jax.ShapeDtypeStruct((b_pad, n_out), jnp.float32),
        grid=(n_tiles,),
        in_specs=[
            pl.BlockSpec((tm, d_in), lambda i: (i, 0)),        # x: tiled over batch (f32)
            # Weights/biases: constant index_map -> fetched once, resident in VMEM.
            # TODO(synk): at large hidden_dim on v7x, single-buffer these resident
            # weights (pipeline_mode=pl.Buffered(1)) to halve the VMEM footprint.
            pl.BlockSpec((d_in, hidden_p), lambda i: (0, 0)),
            pl.BlockSpec((1, hidden_p), lambda i: (0, 0)),
            pl.BlockSpec((hidden_p, h2_p), lambda i: (0, 0)),
            pl.BlockSpec((1, h2_p), lambda i: (0, 0)),
            pl.BlockSpec((h2_p, n_out), lambda i: (0, 0)),
            pl.BlockSpec((1, n_out), lambda i: (0, 0)),
        ],
        out_specs=pl.BlockSpec((tm, n_out), lambda i: (i, 0)),  # narrow f32 logits
        compiler_params=pltpu.CompilerParams(
            dimension_semantics=("parallel",),                   # v7x: shard batch over 2 TCs
        ),
        cost_estimate=pl.CostEstimate(
            flops=flops, transcendentals=0, bytes_accessed=bytes_accessed),
    )(x, w1, b1, w2, b2, w3, b3)

    if b_pad != b:
        logits_padded = logits_padded[:b]
    return logits_padded


def reference_forward_f32(x, p):
    """Pure-JAX f32 reference of the PyTorch module (eval mode)."""
    h1 = jnp.maximum(x @ p["w1"] + p["b1"], 0.0)
    h2 = jnp.maximum(h1 @ p["w2"] + p["b2"], 0.0)
    return h2 @ p["w3"] + p["b3"]


def reference_forward_bf16(x, padded):
    """Pure-JAX reference with the same bf16-operand / f32-accumulate recipe as the kernel."""
    h1 = jnp.dot(x.astype(jnp.bfloat16), padded["w1"],
                 preferred_element_type=jnp.float32) + padded["b1"]
    h1 = jnp.maximum(h1, 0.0)
    h2 = jnp.dot(h1.astype(jnp.bfloat16), padded["w2"],
                 preferred_element_type=jnp.float32) + padded["b2"]
    h2 = jnp.maximum(h2, 0.0)
    return jnp.dot(h2.astype(jnp.bfloat16), padded["w3"],
                   preferred_element_type=jnp.float32) + padded["b3"]


if __name__ == "__main__":
    # Small shapes consistent with the module's constructor/forward.
    batch = 8
    input_dim = 32
    hidden_dim = 128
    num_demographics = 4

    key = jax.random.PRNGKey(0)
    kx, kp = jax.random.split(key)

    x = jax.random.normal(kx, (batch, input_dim), jnp.float32)
    params = make_params(kp, input_dim, hidden_dim, num_demographics)
    padded = pad_and_cast_params(params)

    logits = demographic_adversary_forward(x, padded, num_demographics)
    jax.block_until_ready(logits)
    assert logits.shape == (batch, num_demographics), "bad output shape"

    ref_bf16 = reference_forward_bf16(x, padded)
    ref_f32 = reference_forward_f32(x, params)
    assert jnp.allclose(logits, ref_bf16, atol=1e-4, rtol=1e-4), "mismatch vs bf16 reference"
    assert jnp.allclose(logits, ref_f32, atol=5e-2, rtol=5e-2), "mismatch vs f32 reference"

    print("KERNEL_OK")
</pallas_src>

<mosaic_0001>
module attributes {stable_mosaic.version = 11 : i64} {
  func.func @demographic_adversary_kernel(%arg0: i32, %arg1: memref<8x32xf32, #tpu.memory_space<vmem>>, %arg2: memref<32x128xbf16, #tpu.memory_space<vmem>>, %arg3: memref<1x128xf32, #tpu.memory_space<vmem>>, %arg4: memref<128x128xbf16, #tpu.memory_space<vmem>>, %arg5: memref<1x128xf32, #tpu.memory_space<vmem>>, %arg6: memref<128x4xbf16, #tpu.memory_space<vmem>>, %arg7: memref<1x4xf32, #tpu.memory_space<vmem>>, %arg8: memref<8x4xf32, #tpu.memory_space<vmem>>) attributes {dimension_semantics = [#tpu.dimension_semantics<parallel>], iteration_bounds = array<i64: 1>, scalar_prefetch = 0 : i64, scratch_operands = 0 : i64, tpu.core_type = #tpu.core_type<tc>, window_params = [{transform_indices = @transform_0, window_bounds = array<i64: 8, 32>}, {pipeline_mode = #tpu.pipeline_mode<synchronous>, transform_indices = @transform_1, window_bounds = array<i64: 32, 128>}, {pipeline_mode = #tpu.pipeline_mode<synchronous>, transform_indices = @transform_2, window_bounds = array<i64: 1, 128>}, {pipeline_mode = #tpu.pipeline_mode<synchronous>, transform_indices = @transform_3, window_bounds = array<i64: 128, 128>}, {pipeline_mode = #tpu.pipeline_mode<synchronous>, transform_indices = @transform_4, window_bounds = array<i64: 1, 128>}, {pipeline_mode = #tpu.pipeline_mode<synchronous>, transform_indices = @transform_5, window_bounds = array<i64: 128, 4>}, {pipeline_mode = #tpu.pipeline_mode<synchronous>, transform_indices = @transform_6, window_bounds = array<i64: 1, 4>}, {transform_indices = @transform_7, window_bounds = array<i64: 8, 4>}]} {
    %c0 = arith.constant 0 : index
    %c0_0 = arith.constant 0 : index
    %0 = vector.load %arg1[%c0, %c0_0] : memref<8x32xf32, #tpu.memory_space<vmem>>, vector<8x32xf32>
    %1 = arith.truncf %0 : vector<8x32xf32> to vector<8x32xbf16>
    %c0_1 = arith.constant 0 : index
    %c0_2 = arith.constant 0 : index
    %2 = vector.load %arg2[%c0_1, %c0_2] : memref<32x128xbf16, #tpu.memory_space<vmem>>, vector<32x128xbf16>
    %cst = arith.constant dense<0.000000e+00> : vector<8x128xf32>
    %3 = tpu.matmul %1, %2, %cst {dimension_numbers = #tpu.dot_dimension_numbers<[1], [0], [0], [1], [0, 0, 1, 1], [], []>} : vector<8x32xbf16>, vector<32x128xbf16>, vector<8x128xf32> -> vector<8x128xf32>
    %c0_3 = arith.constant 0 : index
    %c0_4 = arith.constant 0 : index
    %4 = vector.load %arg3[%c0_3, %c0_4] : memref<1x128xf32, #tpu.memory_space<vmem>>, vector<1x128xf32>
    %5 = vector.broadcast %4 : vector<1x128xf32> to vector<8x128xf32>
    %6 = arith.addf %3, %5 : vector<8x128xf32>
    %cst_5 = arith.constant 0.000000e+00 : f32
    %7 = vector.broadcast %cst_5 : f32 to vector<8x128xf32>
    %8 = arith.maximumf %6, %7 : vector<8x128xf32>
    %9 = arith.truncf %8 : vector<8x128xf32> to vector<8x128xbf16>
    %c0_6 = arith.constant 0 : index
    %c0_7 = arith.constant 0 : index
    %10 = vector.load %arg4[%c0_6, %c0_7] : memref<128x128xbf16, #tpu.memory_space<vmem>>, vector<128x128xbf16>
    %cst_8 = arith.constant dense<0.000000e+00> : vector<8x128xf32>
    %11 = tpu.matmul %9, %10, %cst_8 {dimension_numbers = #tpu.dot_dimension_numbers<[1], [0], [0], [1], [0, 0, 1, 1], [], []>} : vector<8x128xbf16>, vector<128x128xbf16>, vector<8x128xf32> -> vector<8x128xf32>
    %c0_9 = arith.constant 0 : index
    %c0_10 = arith.constant 0 : index
    %12 = vector.load %arg5[%c0_9, %c0_10] : memref<1x128xf32, #tpu.memory_space<vmem>>, vector<1x128xf32>
    %13 = vector.broadcast %12 : vector<1x128xf32> to vector<8x128xf32>
    %14 = arith.addf %11, %13 : vector<8x128xf32>
    %cst_11 = arith.constant 0.000000e+00 : f32
    %15 = vector.broadcast %cst_11 : f32 to vector<8x128xf32>
    %16 = arith.maximumf %14, %15 : vector<8x128xf32>
    %17 = arith.truncf %16 : vector<8x128xf32> to vector<8x128xbf16>
    %c0_12 = arith.constant 0 : index
    %c0_13 = arith.constant 0 : index
    %18 = vector.load %arg6[%c0_12, %c0_13] : memref<128x4xbf16, #tpu.memory_space<vmem>>, vector<128x4xbf16>
    %cst_14 = arith.constant dense<0.000000e+00> : vector<8x4xf32>
    %19 = tpu.matmul %17, %18, %cst_14 {dimension_numbers = #tpu.dot_dimension_numbers<[1], [0], [0], [1], [0, 0, 1, 1], [], []>} : vector<8x128xbf16>, vector<128x4xbf16>, vector<8x4xf32> -> vector<8x4xf32>
    %c0_15 = arith.constant 0 : index
    %c0_16 = arith.constant 0 : index
    %20 = vector.load %arg7[%c0_15, %c0_16] : memref<1x4xf32, #tpu.memory_space<vmem>>, vector<1x4xf32>
    %21 = vector.broadcast %20 : vector<1x4xf32> to vector<8x4xf32>
    %22 = arith.addf %19, %21 : vector<8x4xf32>
    %c0_17 = arith.constant 0 : index
    %c0_18 = arith.constant 0 : index
    %23 = vector.load %arg8[%c0_17, %c0_18] : memref<8x4xf32, #tpu.memory_space<vmem>>, vector<8x4xf32>
    tpu.vector_store %arg8[%c0_17, %c0_18], %22 {strides = array<i32>} : memref<8x4xf32, #tpu.memory_space<vmem>>, vector<8x4xf32>,
    return
  }
  func.func @transform_0(%arg0: i32) -> (i32, i32) {
    %c0_i32 = arith.constant 0 : i32
    %c0_i32_0 = arith.constant 0 : i32
    return %arg0, %c0_i32 : i32, i32
  }
  func.func @transform_1(%arg0: i32) -> (i32, i32) {
    %c0_i32 = arith.constant 0 : i32
    %c0_i32_0 = arith.constant 0 : i32
    %c0_i32_1 = arith.constant 0 : i32
    return %c0_i32, %c0_i32_0 : i32, i32
  }
  func.func @transform_2(%arg0: i32) -> (i32, i32) {
    %c0_i32 = arith.constant 0 : i32
    %c0_i32_0 = arith.constant 0 : i32
    %c0_i32_1 = arith.constant 0 : i32
    return %c0_i32, %c0_i32_0 : i32, i32
  }
  func.func @transform_3(%arg0: i32) -> (i32, i32) {
    %c0_i32 = arith.constant 0 : i32
    %c0_i32_0 = arith.constant 0 : i32
    %c0_i32_1 = arith.constant 0 : i32
    return %c0_i32, %c0_i32_0 : i32, i32
  }
  func.func @transform_4(%arg0: i32) -> (i32, i32) {
    %c0_i32 = arith.constant 0 : i32
    %c0_i32_0 = arith.constant 0 : i32
    %c0_i32_1 = arith.constant 0 : i32
    return %c0_i32, %c0_i32_0 : i32, i32
  }
  func.func @transform_5(%arg0: i32) -> (i32, i32) {
    %c0_i32 = arith.constant 0 : i32
    %c0_i32_0 = arith.constant 0 : i32
    %c0_i32_1 = arith.constant 0 : i32
    return %c0_i32, %c0_i32_0 : i32, i32
  }
  func.func @transform_6(%arg0: i32) -> (i32, i32) {
    %c0_i32 = arith.constant 0 : i32
    %c0_i32_0 = arith.constant 0 : i32
    %c0_i32_1 = arith.constant 0 : i32
    return %c0_i32, %c0_i32_0 : i32, i32
  }
  func.func @transform_7(%arg0: i32) -> (i32, i32) {
    %c0_i32 = arith.constant 0 : i32
    %c0_i32_0 = arith.constant 0 : i32
    return %arg0, %c0_i32 : i32, i32
  }
}

</mosaic_0001>

<bundles_post_ra>
// kernel: tpu_custom_call.1
= control target key start
LH: loop header
LB: loop body
LE: loop exit
PB: predicated region body
PF: predicated region fallthrough
CT: control target
= control target key end

     0   :  { %12 = vsyncpa [#allocation3], 0  ;;  %s530_s0 = inlined_call_operand.hbm [shape: f32[8,32], index: 0, kind: input, shape index: {}]   ;;  %s531_s1 = inlined_call_operand.hbm [shape: bf16[32,128], index: 1, kind: input, shape index: {}]   ;;  %s532_s2 = inlined_call_operand.vmem [shape: f32[1,128], index: 2, kind: input, shape index: {}]   ;;  %s533_s3 = inlined_call_operand.vmem [shape: bf16[128,128], index: 3, kind: input, shape index: {}]   ;;  %s534_s4 = inlined_call_operand.vmem [shape: f32[1,128], index: 4, kind: input, shape index: {}]   ;;  %s535_s5 = inlined_call_operand.vmem [shape: bf16[128,4], index: 5, kind: input, shape index: {}]   ;;  %s536_s6 = inlined_call_operand.vmem [shape: f32[1,4], index: 6, kind: input, shape index: {}]   ;;  %s537_s7 = inlined_call_operand.vmem [shape: f32[8,4], index: 7, kind: output, shape index: {}]  }
   0x1   :  { %s19_s26 = sshll.u32 %s530_s0, 4  ;;  %s20_s26 = int_to_ptr.hbm [resolvable:$true] %s19_s26 }
   0x2   :  { %13 = vsyncpa [#allocation5], 0  ;;  %s420_s27 = smov [#allocation2]   ;;  %s29_s8 = sshll.u32 %s531_s1, 4  ;;  %s30_s8 = int_to_ptr.hbm [resolvable:$true] %s29_s8 }
   0x3   :  { %s21_s28 = sshll.u32 %s420_s27, 4  ;;  %s421_s9 = smov [#allocation4]   ;;  %s22_s28 = int_to_ptr.vmem [resolvable:$true] %s21_s28 }
   0x4   :  { %24 = dma.hbm_to_vmem [thread:$0]  %s20_s26, 128, %s22_s28, [#allocation3]  }
   0x5   :  { %s31_s10 = sshll.u32 %s421_s9, 4  ;;  %s422_s11 = smov 64   ;;  %s32_s10 = int_to_ptr.vmem [resolvable:$true] %s31_s10 }
   0x6   :  { %s423_s12 = smov 4  }
   0x7   :  { %37 = dma.hbm_to_vmem [thread:$0]  %s30_s8, 256, %s32_s10, [#allocation5], %s422_s11, %s422_s11, %s423_s12  }
   0x8   :  { %416 = dma.done.wait [#allocation3], 128  }
   0x9   :  { %417 = vsyncadd [#allocation3], 4294967168 }
   0xa   :  { %418 = dma.done.wait [#allocation5], 256  }
   0xb   :  { %419 = vsyncadd [#allocation5], 4294967040  ;;  %v344_v0 = vld [vmem:[#allocation4 + $0x8] sm:$0xff]  ;;  %v352_v1 = vld [vmem:[%s533_s3 + $0x38] sm:$0xff]  ;;  %vm79_vm0 = vcmask 261120   ;;  %vm262_vm1 = vcmask 31744  }
   0xc   :  { %89 = vmatpush.bf16.msra.mxu0 %v344_v0  ;;  %v343_v2 = vld [vmem:[#allocation4] sm:$0xff]  ;;  %v57_v3 = vld [vmem:[#allocation2] sm:$0xff]  ;;  %166 = vmatpush.bf16.msra.mxu1 %v352_v1  ;;  %v351_v4 = vld [vmem:[%s533_s3 + $0x30] sm:$0xff] }
   0xd   :  { %v58_v5 = vpack.c.bf16 %v57_v3, %v57_v3  ;;  %v350_v6 = vld [vmem:[%s533_s3 + $0x28] sm:$0xff]  ;;  %v349_v7 = vld [vmem:[%s533_s3 + $0x20] sm:$0xff]  ;;  %v348_v8 = vld [vmem:[%s533_s3 + $0x18] sm:$0xff] }
   0xe   :  { %v347_v9 = vld [vmem:[%s533_s3 + $0x10] sm:$0xff]  ;;  %v346_v10 = vld [vmem:[%s533_s3 + $0x8] sm:$0xff]  ;;  %v345_v11 = vld [vmem:[%s533_s3] sm:$0xff] }
   0xf   :  { %v360_v12 = vld [vmem:[%s535_s5 + $0x38] sm:$0xff]  ;;  %v359_v13 = vld [vmem:[%s535_s5 + $0x30] sm:$0xff]  ;;  %v358_v14 = vld [vmem:[%s535_s5 + $0x28] sm:$0xff] }
  0x10   :  { %90 = vmatpush.bf16.msra.mxu0 %v343_v2  ;;  %167 = vmatpush.bf16.msra.mxu1 %v351_v4  ;;  %v357_v15 = vld [vmem:[%s535_s5 + $0x20] sm:$0xff]  ;;  %v356_v16 = vld [vmem:[%s535_s5 + $0x18] sm:$0xff]  ;;  %v355_v17 = vld [vmem:[%s535_s5 + $0x10] sm:$0xff] }
  0x11   :  { %249 = vmatpush.bf16.msra.mxu2 %v360_v12  ;;  %v365_v18 = vld [vmem:[%s532_s2] ss:$0 sm:$0xff]  ;;  %v354_v24 = vld [vmem:[%s535_s5 + $0x8] sm:$0xff] }
  0x12   :  { %v353_v25 = vld [vmem:[%s535_s5] sm:$0xff] }
  0x13   :  { %278 = vmatmul.msk.bf16.vlgmr.msra.gmra.mxu0 %vm79_vm0, %v58_v5  ;;  %v366_v26 = vld [vmem:[%s534_s4] ss:$0 sm:$0xff] }
  0x14   :  { %168 = vmatpush.bf16.msra.mxu1 %v350_v6  ;;  %v367_v32 = vld [vmem:[%s536_s6] ss:$0 sm:$0xff] }
  0x15   :  { %250 = vmatpush.bf16.msra.mxu2 %v359_v13 }
  0x18   :  { %169 = vmatpush.bf16.msra.mxu1 %v349_v7 }
  0x19   :  { %251 = vmatpush.bf16.msra.mxu2 %v358_v14 }
  0x1c   :  { %170 = vmatpush.bf16.msra.mxu1 %v348_v8 }
  0x1d   :  { %252 = vmatpush.bf16.msra.mxu2 %v357_v15 }
  0x20   :  { %171 = vmatpush.bf16.msra.mxu1 %v347_v9 }
  0x21   :  { %253 = vmatpush.bf16.msra.mxu2 %v356_v16 }
  0x24   :  { %172 = vmatpush.bf16.msra.mxu1 %v346_v10 }
  0x25   :  { %254 = vmatpush.bf16.msra.mxu2 %v355_v17 }
  0x28   :  { %173 = vmatpush.bf16.msra.mxu1 %v345_v11 }
  0x29   :  { %255 = vmatpush.bf16.msra.mxu2 %v354_v24 }
  0x2d   :  { %256 = vmatpush.bf16.msra.mxu2 %v353_v25 }
  0x90   :  { %v92_v19 = vpop.f32.mrf.mxu0 }
  0x91   :  { %v93_v20 = vadd.f32 %v365_v18, %v92_v19 }
  0x93   :  { %v96_v21 = vmax.f32 %v93_v20, 0.0 }
  0x95   :  { %v97_v22 = vpack.c.bf16 %v96_v21, %v96_v21 }
  0x97   :  { %174 = vmatmul.bf16.vlgmr.msra.gmra.mxu1 %v97_v22 }
  0x98   :  { %v94_v23 = vpop.f32.mrf.mxu0 }
 0x114   :  { %v175_v27 = vpop.f32.mrf.mxu1 }
 0x115   :  { %v176_v28 = vadd.f32 %v366_v26, %v175_v27 }
 0x117   :  { %v179_v29 = vmax.f32 %v176_v28, 0.0 }
 0x119   :  { %v180_v30 = vpack.c.bf16 %v179_v29, %v179_v29 }
 0x11b   :  { %257 = vmatmul.bf16.vlgmr.msra.gmra.mxu2 %v180_v30 }
 0x11c   :  { %v177_v31 = vpop.f32.mrf.mxu1 }
 0x19e   :  { %v258_v33 = vpop.f32.mrf.mxu2 }
 0x19f   :  { %v259_v34 = vadd.f32 %v367_v32, %v258_v33 }
 0x1a1   :  { %263 = vst.msk [vmem:[%s537_s7] sm:$0xff] %vm262_vm1, %v259_v34 }
 0x1a6   :  { %v260_v35 = vpop.f32.mrf.mxu2 }
 0x1a7   :  { %268 = vsyncpa [#allocation3], 1 }
 0x1a8   :  { %269 = vsyncpa [#allocation5], 1 }

</bundles_post_ra>
